<compile_context>
chip_gen: v5e
topology: v5e:2x2
jax: 0.10.0
libtpu: 0.0.40
codegen_flags: <defaults>
</compile_context>

<pallas_src>
import jax
import jax.numpy as jnp
import numpy as np
from jax.experimental import pallas as pl
from jax.experimental.pallas import tpu as pltpu

# ---- static problem sizes (implied by the module: fc1.in_features == 160) ----
N = 2            # batch (and LSTM sequence length, see note above)
C_IN = 2
L_IN = 23        # conv1 -> 21, maxpool(3) -> 7, conv2 -> 5, 32*5 == 160
K = 3
POOL = 3
C1 = 16
C2 = 32
L1 = L_IN - (K - 1)      # 21
P = L1 // POOL           # 7
L2 = P - (K - 1)         # 5
FC1_OUT = 80
HID = 20
NUM_CLASSES = 5
BN_EPS = 1e-5


def cnn_lstm_kernel(z1_ref, w1_ref, bn1s_ref, bn1h_ref,
                    w2_ref, bn2s_ref, bn2h_ref,
                    fc1w_ref, fc1b_ref,
                    wih_ref, whh_ref, blstm_ref,
                    fc2w_ref, fc2b_ref, out_ref):
    f32 = jnp.float32

    # ---- conv1 (all samples + all pooling phases in one im2col dot) + BN1 ----
    y1 = jnp.dot(z1_ref[...], w1_ref[...], preferred_element_type=f32)
    y1 = y1 * bn1s_ref[...] + bn1h_ref[...]                    # (POOL*N, P*C1)

    # MaxPool1d(3): elementwise max over the three pooling-phase row blocks,
    # then ReLU (matches Conv -> BN -> MaxPool -> ReLU ordering).
    pooled = jnp.maximum(jnp.maximum(y1[0:N, :], y1[N:2 * N, :]),
                         y1[2 * N:3 * N, :])
    pooled = jnp.maximum(pooled, 0.0)                          # (N, P*C1)

    # TODO(synk): Dropout is identity in eval mode; no RNG masking applied.

    # ---- conv2 (block-banded weight) + folded BN2 + ReLU --------------------
    y2 = jnp.dot(pooled, w2_ref[...], preferred_element_type=f32)
    y2 = jnp.maximum(y2 * bn2s_ref[...] + bn2h_ref[...], 0.0)  # (N, L2*C2)=(N,160)

    # ---- fc1 + ReLU (flatten order folded into the permuted weight) ---------
    h4 = jnp.maximum(
        jnp.dot(y2, fc1w_ref[...], preferred_element_type=f32) + fc1b_ref[...],
        0.0)                                                   # (N, 80)

    # ---- LSTM over the batch axis (PyTorch unbatched sequence) --------------
    # Input contribution for every timestep in one dot; bias folded in.
    xg = jnp.dot(h4, wih_ref[...], preferred_element_type=f32) + blstm_ref[...]

    h = jnp.zeros((1, HID), f32)
    c = jnp.zeros((1, HID), f32)
    hs = []
    for t in range(N):
        gates = xg[t:t + 1, :] + jnp.dot(h, whh_ref[...],
                                         preferred_element_type=f32)  # (1,4*HID)
        i_g = jax.nn.sigmoid(gates[:, 0:HID])
        f_g = jax.nn.sigmoid(gates[:, HID:2 * HID])
        g_g = jnp.tanh(gates[:, 2 * HID:3 * HID])
        o_g = jax.nn.sigmoid(gates[:, 3 * HID:4 * HID])
        c = f_g * c + i_g * g_g
        h = o_g * jnp.tanh(c)
        hs.append(h)

    H = jnp.concatenate(hs, axis=0)                            # (N, HID)

    # ---- fc2 + ReLU + softmax(dim=1), single batched store ------------------
    y = jnp.dot(H, fc2w_ref[...], preferred_element_type=f32) + fc2b_ref[...]
    y = jnp.maximum(y, 0.0)
    m = jnp.max(y, axis=-1, keepdims=True)
    e = jnp.exp(y - m)
    out_ref[...] = e / jnp.sum(e, axis=-1, keepdims=True)


def cnn_lstm_forward(x_ncl, params):
    """x_ncl: (N, C_IN, L_IN) float32, PyTorch layout.  Returns (N, NUM_CLASSES)."""
    (W1, b1, g1, be1, m1, v1,
     W2, b2, g2, be2, m2, v2,
     Wfc1, bfc1, Wih, Whh, bih, bhh, Wfc2, bfc2) = params

    # ---- fold conv bias + BatchNorm running stats into scale/shift ----------
    s1 = g1 / jnp.sqrt(v1 + BN_EPS)
    h1 = (b1 - m1) * s1 + be1
    s2 = g2 / jnp.sqrt(v2 + BN_EPS)
    h2 = (b2 - m2) * s2 + be2
    bn1s = jnp.tile(s1, P)[None, :]          # (1, 112), lane index = j*C1 + c
    bn1h = jnp.tile(h1, P)[None, :]
    bn2s = jnp.tile(s2, L2)[None, :]         # (1, 160), lane index = l*C2 + c
    bn2h = jnp.tile(h2, L2)[None, :]

    # ---- conv1 im2col input: row (r*N + n) = flatten of x[n, r:r+L1, :] -----
    x_lc = jnp.transpose(x_ncl, (0, 2, 1))   # (N, L_IN, C_IN)
    z1 = jnp.concatenate(
        [x_lc[:, r:r + L1, :].reshape(N, L1 * C_IN) for r in range(POOL)],
        axis=0)                              # (POOL*N, 42)

    # ---- conv1 block-banded weight: (42, 112) -------------------------------
    B1 = jnp.transpose(W1, (2, 1, 0)).reshape(K * C_IN, C1)    # (6,16)
    w1 = jnp.zeros((L1 * C_IN, P * C1), jnp.float32)
    for j in range(P):
        w1 = w1.at[POOL * C_IN * j: POOL * C_IN * j + K * C_IN,
                   C1 * j: C1 * (j + 1)].set(B1)

    # ---- conv2 block-banded weight: (112, 160) ------------------------------
    B2 = jnp.transpose(W2, (2, 1, 0)).reshape(K * C1, C2)      # (48,32)
    w2 = jnp.zeros((P * C1, L2 * C2), jnp.float32)
    for l in range(L2):
        w2 = w2.at[C1 * l: C1 * l + K * C1,
                   C2 * l: C2 * (l + 1)].set(B2)

    # ---- fc1 weight permuted to the kernel's (l, c) feature order -----------
    fc1w = jnp.transpose(Wfc1.reshape(FC1_OUT, C2, L2),
                         (2, 1, 0)).reshape(L2 * C2, FC1_OUT)  # (160, 80)

    # ---- LSTM weights gate-concatenated, biases merged -----------------------
    wih = Wih.T                              # (80, 4*HID) gate order i,f,g,o
    whh = Whh.T                              # (HID, 4*HID)
    blstm = (bih + bhh)[None, :]             # (1, 4*HID)
    fc2w = Wfc2.T                            # (HID, NUM_CLASSES)

    args = (z1, w1, bn1s, bn1h,
            w2, bn2s, bn2h,
            fc1w, bfc1[None, :],
            wih, whh, blstm,
            fc2w, bfc2[None, :])

    return pl.pallas_call(
        cnn_lstm_kernel,
        out_shape=jax.ShapeDtypeStruct((N, NUM_CLASSES), jnp.float32),
        in_specs=[pl.BlockSpec(memory_space=pltpu.MemorySpace.VMEM)] * len(args),
        out_specs=pl.BlockSpec(memory_space=pltpu.MemorySpace.VMEM),
    )(*args)


# ---------------- pure-JAX reference (PyTorch NCL semantics) ----------------
def _conv1d_ncl(x, W, b):
    k = W.shape[2]
    lout = x.shape[2] - k + 1
    y = sum(jnp.einsum('ncl,oc->nol', x[:, :, t:t + lout], W[:, :, t])
            for t in range(k))
    return y + b[None, :, None]


def ref_forward(x_ncl, params):
    (W1, b1, g1, be1, m1, v1,
     W2, b2, g2, be2, m2, v2,
     Wfc1, bfc1, Wih, Whh, bih, bhh, Wfc2, bfc2) = params
    y = _conv1d_ncl(x_ncl, W1, b1)
    y = (y - m1[None, :, None]) / jnp.sqrt(v1 + BN_EPS)[None, :, None] \
        * g1[None, :, None] + be1[None, :, None]
    n, c, l = y.shape
    y = y[:, :, :(l // 3) * 3].reshape(n, c, l // 3, 3).max(-1)
    y = jnp.maximum(y, 0.0)
    y = _conv1d_ncl(y, W2, b2)
    y = (y - m2[None, :, None]) / jnp.sqrt(v2 + BN_EPS)[None, :, None] \
        * g2[None, :, None] + be2[None, :, None]
    y = jnp.maximum(y, 0.0)
    flat = y.reshape(n, -1)
    h4 = jnp.maximum(flat @ Wfc1.T + bfc1, 0.0)
    h = jnp.zeros((HID,), jnp.float32)
    c_s = jnp.zeros((HID,), jnp.float32)
    outs = []
    for t in range(n):
        gates = h4[t] @ Wih.T + h @ Whh.T + bih + bhh
        i_g = jax.nn.sigmoid(gates[0:HID])
        f_g = jax.nn.sigmoid(gates[HID:2 * HID])
        g_g = jnp.tanh(gates[2 * HID:3 * HID])
        o_g = jax.nn.sigmoid(gates[3 * HID:4 * HID])
        c_s = f_g * c_s + i_g * g_g
        h = o_g * jnp.tanh(c_s)
        outs.append(h)
    lstm_out = jnp.stack(outs)
    y6 = jnp.maximum(lstm_out @ Wfc2.T + bfc2, 0.0)
    return jax.nn.softmax(y6, axis=1)


if __name__ == "__main__":
    key = jax.random.PRNGKey(0)
    ks = jax.random.split(key, 21)

    def u(k, shape, lo=-0.1, hi=0.1):
        return jax.random.uniform(k, shape, jnp.float32, lo, hi)

    params = (
        u(ks[0], (C1, C_IN, K)), u(ks[1], (C1,)),                # conv1 W, b
        u(ks[2], (C1,), 0.5, 1.5), u(ks[3], (C1,)),              # bn1 gamma, beta
        u(ks[4], (C1,)), u(ks[5], (C1,), 0.5, 1.5),              # bn1 mean, var
        u(ks[6], (C2, C1, K)), u(ks[7], (C2,)),                  # conv2 W, b
        u(ks[8], (C2,), 0.5, 1.5), u(ks[9], (C2,)),              # bn2 gamma, beta
        u(ks[10], (C2,)), u(ks[11], (C2,), 0.5, 1.5),            # bn2 mean, var
        u(ks[12], (FC1_OUT, C2 * L2)), u(ks[13], (FC1_OUT,)),    # fc1
        u(ks[14], (4 * HID, FC1_OUT)), u(ks[15], (4 * HID, HID)),# lstm W_ih, W_hh
        u(ks[16], (4 * HID,)), u(ks[17], (4 * HID,)),            # lstm b_ih, b_hh
        u(ks[18], (NUM_CLASSES, HID)), u(ks[19], (NUM_CLASSES,)),# fc2
    )

    x = u(ks[20], (N, C_IN, L_IN), -1.0, 1.0)                    # PyTorch NCL input

    out = jax.block_until_ready(cnn_lstm_forward(x, params))
    ref = jax.block_until_ready(ref_forward(x, params))

    np.testing.assert_allclose(np.asarray(out), np.asarray(ref),
                               rtol=1e-2, atol=1e-2)
    assert out.shape == (N, NUM_CLASSES)
    print("KERNEL_OK")
</pallas_src>

<mosaic_0001>
module attributes {stable_mosaic.version = 11 : i64} {
  func.func @cnn_lstm_kernel(%arg0: memref<6x42xf32, #tpu.memory_space<vmem>>, %arg1: memref<42x112xf32, #tpu.memory_space<vmem>>, %arg2: memref<1x112xf32, #tpu.memory_space<vmem>>, %arg3: memref<1x112xf32, #tpu.memory_space<vmem>>, %arg4: memref<112x160xf32, #tpu.memory_space<vmem>>, %arg5: memref<1x160xf32, #tpu.memory_space<vmem>>, %arg6: memref<1x160xf32, #tpu.memory_space<vmem>>, %arg7: memref<160x80xf32, #tpu.memory_space<vmem>>, %arg8: memref<1x80xf32, #tpu.memory_space<vmem>>, %arg9: memref<80x80xf32, #tpu.memory_space<vmem>>, %arg10: memref<20x80xf32, #tpu.memory_space<vmem>>, %arg11: memref<1x80xf32, #tpu.memory_space<vmem>>, %arg12: memref<20x5xf32, #tpu.memory_space<vmem>>, %arg13: memref<1x5xf32, #tpu.memory_space<vmem>>, %arg14: memref<2x5xf32, #tpu.memory_space<vmem>>) attributes {dimension_semantics = [], scalar_prefetch = 0 : i64, scratch_operands = 0 : i64, tpu.core_type = #tpu.core_type<tc>} {
    %c0 = arith.constant 0 : index
    %c0_0 = arith.constant 0 : index
    %0 = vector.load %arg0[%c0, %c0_0] : memref<6x42xf32, #tpu.memory_space<vmem>>, vector<6x42xf32>
    %c0_1 = arith.constant 0 : index
    %c0_2 = arith.constant 0 : index
    %1 = vector.load %arg1[%c0_1, %c0_2] : memref<42x112xf32, #tpu.memory_space<vmem>>, vector<42x112xf32>
    %cst = arith.constant dense<0.000000e+00> : vector<6x112xf32>
    %2 = tpu.matmul %0, %1, %cst {dimension_numbers = #tpu.dot_dimension_numbers<[1], [0], [0], [1], [0, 0, 1, 1], [], []>} : vector<6x42xf32>, vector<42x112xf32>, vector<6x112xf32> -> vector<6x112xf32>
    %c0_3 = arith.constant 0 : index
    %c0_4 = arith.constant 0 : index
    %3 = vector.load %arg2[%c0_3, %c0_4] : memref<1x112xf32, #tpu.memory_space<vmem>>, vector<1x112xf32>
    %4 = vector.broadcast %3 : vector<1x112xf32> to vector<6x112xf32>
    %5 = arith.mulf %2, %4 : vector<6x112xf32>
    %c0_5 = arith.constant 0 : index
    %c0_6 = arith.constant 0 : index
    %6 = vector.load %arg3[%c0_5, %c0_6] : memref<1x112xf32, #tpu.memory_space<vmem>>, vector<1x112xf32>
    %7 = vector.broadcast %6 : vector<1x112xf32> to vector<6x112xf32>
    %8 = arith.addf %5, %7 : vector<6x112xf32>
    %9 = vector.extract_strided_slice %8 {offsets = [0, 0], sizes = [2, 112], strides = [1, 1]} : vector<6x112xf32> to vector<2x112xf32>
    %10 = vector.extract_strided_slice %8 {offsets = [2, 0], sizes = [2, 112], strides = [1, 1]} : vector<6x112xf32> to vector<2x112xf32>
    %11 = arith.maximumf %9, %10 : vector<2x112xf32>
    %12 = vector.extract_strided_slice %8 {offsets = [4, 0], sizes = [2, 112], strides = [1, 1]} : vector<6x112xf32> to vector<2x112xf32>
    %13 = arith.maximumf %11, %12 : vector<2x112xf32>
    %cst_7 = arith.constant 0.000000e+00 : f32
    %14 = vector.broadcast %cst_7 : f32 to vector<2x112xf32>
    %15 = arith.maximumf %13, %14 : vector<2x112xf32>
    %c0_8 = arith.constant 0 : index
    %c0_9 = arith.constant 0 : index
    %16 = vector.load %arg4[%c0_8, %c0_9] : memref<112x160xf32, #tpu.memory_space<vmem>>, vector<112x160xf32>
    %cst_10 = arith.constant dense<0.000000e+00> : vector<2x160xf32>
    %17 = tpu.matmul %15, %16, %cst_10 {dimension_numbers = #tpu.dot_dimension_numbers<[1], [0], [0], [1], [0, 0, 1, 1], [], []>} : vector<2x112xf32>, vector<112x160xf32>, vector<2x160xf32> -> vector<2x160xf32>
    %c0_11 = arith.constant 0 : index
    %c0_12 = arith.constant 0 : index
    %18 = vector.load %arg5[%c0_11, %c0_12] : memref<1x160xf32, #tpu.memory_space<vmem>>, vector<1x160xf32>
    %19 = vector.broadcast %18 : vector<1x160xf32> to vector<2x160xf32>
    %20 = arith.mulf %17, %19 : vector<2x160xf32>
    %c0_13 = arith.constant 0 : index
    %c0_14 = arith.constant 0 : index
    %21 = vector.load %arg6[%c0_13, %c0_14] : memref<1x160xf32, #tpu.memory_space<vmem>>, vector<1x160xf32>
    %22 = vector.broadcast %21 : vector<1x160xf32> to vector<2x160xf32>
    %23 = arith.addf %20, %22 : vector<2x160xf32>
    %cst_15 = arith.constant 0.000000e+00 : f32
    %24 = vector.broadcast %cst_15 : f32 to vector<2x160xf32>
    %25 = arith.maximumf %23, %24 : vector<2x160xf32>
    %c0_16 = arith.constant 0 : index
    %c0_17 = arith.constant 0 : index
    %26 = vector.load %arg7[%c0_16, %c0_17] : memref<160x80xf32, #tpu.memory_space<vmem>>, vector<160x80xf32>
    %cst_18 = arith.constant dense<0.000000e+00> : vector<2x80xf32>
    %27 = tpu.matmul %25, %26, %cst_18 {dimension_numbers = #tpu.dot_dimension_numbers<[1], [0], [0], [1], [0, 0, 1, 1], [], []>} : vector<2x160xf32>, vector<160x80xf32>, vector<2x80xf32> -> vector<2x80xf32>
    %c0_19 = arith.constant 0 : index
    %c0_20 = arith.constant 0 : index
    %28 = vector.load %arg8[%c0_19, %c0_20] : memref<1x80xf32, #tpu.memory_space<vmem>>, vector<1x80xf32>
    %29 = vector.broadcast %28 : vector<1x80xf32> to vector<2x80xf32>
    %30 = arith.addf %27, %29 : vector<2x80xf32>
    %cst_21 = arith.constant 0.000000e+00 : f32
    %31 = vector.broadcast %cst_21 : f32 to vector<2x80xf32>
    %32 = arith.maximumf %30, %31 : vector<2x80xf32>
    %c0_22 = arith.constant 0 : index
    %c0_23 = arith.constant 0 : index
    %33 = vector.load %arg9[%c0_22, %c0_23] : memref<80x80xf32, #tpu.memory_space<vmem>>, vector<80x80xf32>
    %cst_24 = arith.constant dense<0.000000e+00> : vector<2x80xf32>
    %34 = tpu.matmul %32, %33, %cst_24 {dimension_numbers = #tpu.dot_dimension_numbers<[1], [0], [0], [1], [0, 0, 1, 1], [], []>} : vector<2x80xf32>, vector<80x80xf32>, vector<2x80xf32> -> vector<2x80xf32>
    %c0_25 = arith.constant 0 : index
    %c0_26 = arith.constant 0 : index
    %35 = vector.load %arg11[%c0_25, %c0_26] : memref<1x80xf32, #tpu.memory_space<vmem>>, vector<1x80xf32>
    %36 = vector.broadcast %35 : vector<1x80xf32> to vector<2x80xf32>
    %37 = arith.addf %34, %36 : vector<2x80xf32>
    %cst_27 = arith.constant 0.000000e+00 : f32
    %38 = vector.broadcast %cst_27 : f32 to vector<1x20xf32>
    %cst_28 = arith.constant 0.000000e+00 : f32
    %39 = vector.broadcast %cst_28 : f32 to vector<1x20xf32>
    %40 = vector.extract_strided_slice %37 {offsets = [0, 0], sizes = [1, 80], strides = [1, 1]} : vector<2x80xf32> to vector<1x80xf32>
    %c0_29 = arith.constant 0 : index
    %c0_30 = arith.constant 0 : index
    %41 = vector.load %arg10[%c0_29, %c0_30] : memref<20x80xf32, #tpu.memory_space<vmem>>, vector<20x80xf32>
    %cst_31 = arith.constant dense<0.000000e+00> : vector<1x80xf32>
    %42 = tpu.matmul %38, %41, %cst_31 {dimension_numbers = #tpu.dot_dimension_numbers<[1], [0], [0], [1], [0, 0, 1, 1], [], []>} : vector<1x20xf32>, vector<20x80xf32>, vector<1x80xf32> -> vector<1x80xf32>
    %43 = arith.addf %40, %42 : vector<1x80xf32>
    %44 = vector.extract_strided_slice %43 {offsets = [0, 0], sizes = [1, 20], strides = [1, 1]} : vector<1x80xf32> to vector<1x20xf32>
    %45 = arith.negf %44 : vector<1x20xf32>
    %46 = math.exp %45 : vector<1x20xf32>
    %cst_32 = arith.constant 1.000000e+00 : f32
    %47 = vector.broadcast %cst_32 : f32 to vector<1x20xf32>
    %48 = arith.addf %47, %46 : vector<1x20xf32>
    %49 = arith.divf %47, %48 : vector<1x20xf32>
    %50 = vector.extract_strided_slice %43 {offsets = [0, 20], sizes = [1, 20], strides = [1, 1]} : vector<1x80xf32> to vector<1x20xf32>
    %51 = arith.negf %50 : vector<1x20xf32>
    %52 = math.exp %51 : vector<1x20xf32>
    %cst_33 = arith.constant 1.000000e+00 : f32
    %53 = vector.broadcast %cst_33 : f32 to vector<1x20xf32>
    %54 = arith.addf %53, %52 : vector<1x20xf32>
    %55 = arith.divf %53, %54 : vector<1x20xf32>
    %56 = vector.extract_strided_slice %43 {offsets = [0, 40], sizes = [1, 20], strides = [1, 1]} : vector<1x80xf32> to vector<1x20xf32>
    %57 = math.tanh %56 : vector<1x20xf32>
    %58 = vector.extract_strided_slice %43 {offsets = [0, 60], sizes = [1, 20], strides = [1, 1]} : vector<1x80xf32> to vector<1x20xf32>
    %59 = arith.negf %58 : vector<1x20xf32>
    %60 = math.exp %59 : vector<1x20xf32>
    %cst_34 = arith.constant 1.000000e+00 : f32
    %61 = vector.broadcast %cst_34 : f32 to vector<1x20xf32>
    %62 = arith.addf %61, %60 : vector<1x20xf32>
    %63 = arith.divf %61, %62 : vector<1x20xf32>
    %64 = arith.mulf %55, %39 : vector<1x20xf32>
    %65 = arith.mulf %49, %57 : vector<1x20xf32>
    %66 = arith.addf %64, %65 : vector<1x20xf32>
    %67 = math.tanh %66 : vector<1x20xf32>
    %68 = arith.mulf %63, %67 : vector<1x20xf32>
    %69 = vector.extract_strided_slice %37 {offsets = [1, 0], sizes = [1, 80], strides = [1, 1]} : vector<2x80xf32> to vector<1x80xf32>
    %c0_35 = arith.constant 0 : index
    %c0_36 = arith.constant 0 : index
    %70 = vector.load %arg10[%c0_35, %c0_36] : memref<20x80xf32, #tpu.memory_space<vmem>>, vector<20x80xf32>
    %cst_37 = arith.constant dense<0.000000e+00> : vector<1x80xf32>
    %71 = tpu.matmul %68, %70, %cst_37 {dimension_numbers = #tpu.dot_dimension_numbers<[1], [0], [0], [1], [0, 0, 1, 1], [], []>} : vector<1x20xf32>, vector<20x80xf32>, vector<1x80xf32> -> vector<1x80xf32>
    %72 = arith.addf %69, %71 : vector<1x80xf32>
    %73 = vector.extract_strided_slice %72 {offsets = [0, 0], sizes = [1, 20], strides = [1, 1]} : vector<1x80xf32> to vector<1x20xf32>
    %74 = arith.negf %73 : vector<1x20xf32>
    %75 = math.exp %74 : vector<1x20xf32>
    %cst_38 = arith.constant 1.000000e+00 : f32
    %76 = vector.broadcast %cst_38 : f32 to vector<1x20xf32>
    %77 = arith.addf %76, %75 : vector<1x20xf32>
    %78 = arith.divf %76, %77 : vector<1x20xf32>
    %79 = vector.extract_strided_slice %72 {offsets = [0, 20], sizes = [1, 20], strides = [1, 1]} : vector<1x80xf32> to vector<1x20xf32>
    %80 = arith.negf %79 : vector<1x20xf32>
    %81 = math.exp %80 : vector<1x20xf32>
    %cst_39 = arith.constant 1.000000e+00 : f32
    %82 = vector.broadcast %cst_39 : f32 to vector<1x20xf32>
    %83 = arith.addf %82, %81 : vector<1x20xf32>
    %84 = arith.divf %82, %83 : vector<1x20xf32>
    %85 = vector.extract_strided_slice %72 {offsets = [0, 40], sizes = [1, 20], strides = [1, 1]} : vector<1x80xf32> to vector<1x20xf32>
    %86 = math.tanh %85 : vector<1x20xf32>
    %87 = vector.extract_strided_slice %72 {offsets = [0, 60], sizes = [1, 20], strides = [1, 1]} : vector<1x80xf32> to vector<1x20xf32>
    %88 = arith.negf %87 : vector<1x20xf32>
    %89 = math.exp %88 : vector<1x20xf32>
    %cst_40 = arith.constant 1.000000e+00 : f32
    %90 = vector.broadcast %cst_40 : f32 to vector<1x20xf32>
    %91 = arith.addf %90, %89 : vector<1x20xf32>
    %92 = arith.divf %90, %91 : vector<1x20xf32>
    %93 = arith.mulf %84, %66 : vector<1x20xf32>
    %94 = arith.mulf %78, %86 : vector<1x20xf32>
    %95 = arith.addf %93, %94 : vector<1x20xf32>
    %96 = math.tanh %95 : vector<1x20xf32>
    %97 = arith.mulf %92, %96 : vector<1x20xf32>
    %98 = tpu.concatenate %68, %97 in 0 : vector<1x20xf32>, vector<1x20xf32> -> vector<2x20xf32>
    %c0_41 = arith.constant 0 : index
    %c0_42 = arith.constant 0 : index
    %99 = vector.load %arg12[%c0_41, %c0_42] : memref<20x5xf32, #tpu.memory_space<vmem>>, vector<20x5xf32>
    %cst_43 = arith.constant dense<0.000000e+00> : vector<2x5xf32>
    %100 = tpu.matmul %98, %99, %cst_43 {dimension_numbers = #tpu.dot_dimension_numbers<[1], [0], [0], [1], [0, 0, 1, 1], [], []>} : vector<2x20xf32>, vector<20x5xf32>, vector<2x5xf32> -> vector<2x5xf32>
    %c0_44 = arith.constant 0 : index
    %c0_45 = arith.constant 0 : index
    %101 = vector.load %arg13[%c0_44, %c0_45] : memref<1x5xf32, #tpu.memory_space<vmem>>, vector<1x5xf32>
    %102 = vector.broadcast %101 : vector<1x5xf32> to vector<2x5xf32>
    %103 = arith.addf %100, %102 : vector<2x5xf32>
    %cst_46 = arith.constant 0.000000e+00 : f32
    %104 = vector.broadcast %cst_46 : f32 to vector<2x5xf32>
    %105 = arith.maximumf %103, %104 : vector<2x5xf32>
    %cst_47 = arith.constant dense<0xFF800000> : vector<2xf32>
    %106 = vector.multi_reduction <maximumf>, %105, %cst_47 [1] : vector<2x5xf32> to vector<2xf32>
    %107 = vector.shape_cast %106 : vector<2xf32> to vector<2x1xf32>
    %108 = vector.broadcast %107 : vector<2x1xf32> to vector<2x5xf32>
    %109 = arith.subf %105, %108 : vector<2x5xf32>
    %110 = math.exp %109 : vector<2x5xf32>
    %cst_48 = arith.constant dense<0.000000e+00> : vector<2xf32>
    %111 = vector.multi_reduction <add>, %110, %cst_48 [1] : vector<2x5xf32> to vector<2xf32>
    %112 = vector.shape_cast %111 : vector<2xf32> to vector<2x1xf32>
    %113 = vector.broadcast %112 : vector<2x1xf32> to vector<2x5xf32>
    %114 = arith.divf %110, %113 : vector<2x5xf32>
    %c0_49 = arith.constant 0 : index
    %c0_50 = arith.constant 0 : index
    %115 = vector.load %arg14[%c0_49, %c0_50] : memref<2x5xf32, #tpu.memory_space<vmem>>, vector<2x5xf32>
    tpu.vector_store %arg14[%c0_49, %c0_50], %114 {strides = array<i32>} : memref<2x5xf32, #tpu.memory_space<vmem>>, vector<2x5xf32>,
    return
  }
}

</mosaic_0001>

<bundles_post_ra>
// kernel: tpu_custom_call.1
= control target key start
LH: loop header
LB: loop body
LE: loop exit
PB: predicated region body
PF: predicated region fallthrough
CT: control target
= control target key end

     0   :  { %vm59_vm0 = vcmask 1041408   ;;  %s920_s0 = inlined_call_operand.vmem [shape: f32[6,42], index: 0, kind: input, shape index: {}]   ;;  %s921_s1 = inlined_call_operand.vmem [shape: f32[42,112], index: 1, kind: input, shape index: {}]   ;;  %s922_s2 = inlined_call_operand.vmem [shape: f32[1,112], index: 2, kind: input, shape index: {}]   ;;  %s923_s3 = inlined_call_operand.vmem [shape: f32[1,112], index: 3, kind: input, shape index: {}]   ;;  %s924_s4 = inlined_call_operand.vmem [shape: f32[112,160], index: 4, kind: input, shape index: {}]   ;;  %s925_s5 = inlined_call_operand.vmem [shape: f32[1,160], index: 5, kind: input, shape index: {}]   ;;  %s926_s6 = inlined_call_operand.vmem [shape: f32[1,160], index: 6, kind: input, shape index: {}]   ;;  %s927_s7 = inlined_call_operand.vmem [shape: f32[160,80], index: 7, kind: input, shape index: {}]   ;;  %s928_s8 = inlined_call_operand.vmem [shape: f32[1,80], index: 8, kind: input, shape index: {}]   ;;  %s929_s9 = inlined_call_operand.vmem [shape: f32[80,80], index: 9, kind: input, shape index: {}]   ;;  %s930_s10 = inlined_call_operand.vmem [shape: f32[20,80], index: 10, kind: input, shape index: {}]   ;;  %s931_s11 = inlined_call_operand.vmem [shape: f32[1,80], index: 11, kind: input, shape index: {}]   ;;  %s932_s12 = inlined_call_operand.vmem [shape: f32[20,5], index: 12, kind: input, shape index: {}]   ;;  %s933_s13 = inlined_call_operand.vmem [shape: f32[1,5], index: 13, kind: input, shape index: {}]   ;;  %s934_s14 = inlined_call_operand.hbm [shape: f32[2,5], index: 14, kind: output, shape index: {}]  }
   0x1   :  { %v54_v0 = vld [vmem:[%s921_s1 + $0x28] sm:$0x3]  ;;  %v53_v1 = vld [vmem:[%s921_s1 + $0x20] sm:$0xff]  ;;  %v52_v2 = vld [vmem:[%s921_s1 + $0x18] sm:$0xff] }
   0x2   :  { %516 = vmatpush.msk.msra.mxu0 %vm59_vm0, %v54_v0  ;;  %v127_v3 = vld [vmem:[%s924_s4 + $0xd0] sm:$0xff]  ;;  %v128_v4 = vld [vmem:[%s924_s4 + $0xd8] sm:$0xff]  ;;  %v125_v5 = vld [vmem:[%s924_s4 + $0xc0] sm:$0xff] }
   0x3   :  { %135 = vmatpush.msra.mxu1 %v127_v3  ;;  %v126_v6 = vld [vmem:[%s924_s4 + $0xc8] sm:$0xff]  ;;  %v51_v7 = vld [vmem:[%s921_s1 + $0x10] sm:$0xff]  ;;  %155 = vmatpush.msra.mxu2 %v128_v4  ;;  %v124_v10 = vld [vmem:[%s924_s4 + $0xb8] sm:$0xff] }
   0x4   :  { %74 = vmatpush.msra.mxu0 %v53_v1  ;;  %v123_v8 = vld [vmem:[%s924_s4 + $0xb0] sm:$0xff]  ;;  %v50_v9 = vld [vmem:[%s921_s1 + $0x8] sm:$0xff]  ;;  %v49_v11 = vld [vmem:[%s921_s1] sm:$0xff] }
   0x5   :  { %136 = vmatpush.msra.mxu1 %v125_v5  ;;  %156 = vmatpush.msra.mxu2 %v126_v6  ;;  %v121_v12 = vld [vmem:[%s924_s4 + $0xa0] sm:$0xff]  ;;  %v122_v13 = vld [vmem:[%s924_s4 + $0xa8] sm:$0xff]  ;;  %v119_v14 = vld [vmem:[%s924_s4 + $0x90] sm:$0xff] }
   0x6   :  { %75 = vmatpush.msra.mxu0 %v52_v2 }
   0x7   :  { %137 = vmatpush.msra.mxu1 %v123_v8  ;;  %157 = vmatpush.msra.mxu2 %v124_v10 }
   0x8   :  { %76 = vmatpush.msra.mxu0 %v51_v7 }
   0x9   :  { %19 = vsyncpa [#allocation3], 0  ;;  %v48_v15 = vld [vmem:[%s920_s0] sm:$0x3f]  ;;  %vm55_vm1 = vcmask 343040   ;;  %138 = vmatpush.msra.mxu1 %v121_v12  ;;  %v120_v16 = vld [vmem:[%s924_s4 + $0x98] sm:$0xff]  ;;  %158 = vmatpush.msra.mxu2 %v122_v13 }
   0xa   :  { %77 = vmatpush.msra.mxu0 %v50_v9  ;;  %v117_v17 = vld [vmem:[%s924_s4 + $0x80] sm:$0xff]  ;;  %v118_v18 = vld [vmem:[%s924_s4 + $0x88] sm:$0xff]  ;;  %v115_v19 = vld [vmem:[%s924_s4 + $0x70] sm:$0xff]  ;;  %vm129_vm2 = vcmask 916480   ;;  %vm215_vm3 = vcmask 261120   ;;  %vm305_vm4 = vcmask 1043456  }
   0xb   :  { %139 = vmatpush.msra.mxu1 %v119_v14  ;;  %159 = vmatpush.msra.mxu2 %v120_v16  ;;  %v116_v20 = vld [vmem:[%s924_s4 + $0x78] sm:$0xff]  ;;  %v113_v21 = vld [vmem:[%s924_s4 + $0x60] sm:$0xff]  ;;  %v114_v22 = vld [vmem:[%s924_s4 + $0x68] sm:$0xff]  ;;  %vm274_vm5 = vcmask 654336   ;;  %s590_s22 = smov 68   ;;  %vm301_vm10 = vcmask 162816  }
   0xc   :  { %78 = vmatpush.msra.mxu0 %v49_v11  ;;  %v111_v23 = vld [vmem:[%s924_s4 + $0x50] sm:$0xff]  ;;  %v112_v24 = vld [vmem:[%s924_s4 + $0x58] sm:$0xff]  ;;  %v109_v25 = vld [vmem:[%s924_s4 + $0x40] sm:$0xff]  ;;  %vm436_vm15 = vcmask 1040384   ;;  %vm474_vm0 = vcmask 33792   ;;  %s507_s30 = sshll.u32 %s934_s14, 4  ;;  %s508_s30 = int_to_ptr.hbm [resolvable:$true] %s507_s30 }
   0xd   :  { %517 = vmatmul.msk.f32.vlgmr.msra.gmra.mxu0 %vm55_vm1, %v48_v15  ;;  %140 = vmatpush.msra.mxu1 %v117_v17  ;;  %v110_v26 = vld [vmem:[%s924_s4 + $0x48] sm:$0xff]  ;;  %v107_v27 = vld [vmem:[%s924_s4 + $0x30] sm:$0xff]  ;;  %v108_v28 = vld [vmem:[%s924_s4 + $0x38] sm:$0xff] }
   0xe   :  { %160 = vmatpush.msra.mxu2 %v118_v18  ;;  %v105_v29 = vld [vmem:[%s924_s4 + $0x20] sm:$0xff]  ;;  %v106_v30 = vld [vmem:[%s924_s4 + $0x28] sm:$0xff]  ;;  %v103_v31 = vld [vmem:[%s924_s4 + $0x10] sm:$0xff] }
   0xf   :  { %141 = vmatpush.msra.mxu1 %v115_v19  ;;  %v104_v32 = vld [vmem:[%s924_s4 + $0x18] sm:$0xff]  ;;  %v101_v33 = vld [vmem:[%s924_s4] sm:$0xff]  ;;  %v102_v34 = vld [vmem:[%s924_s4 + $0x8] sm:$0xff] }
  0x10   :  { %161 = vmatpush.msra.mxu2 %v116_v20  ;;  %v206_v35 = vld [vmem:[%s927_s7 + $0x78] sm:$0xff]  ;;  %v205_v36 = vld [vmem:[%s927_s7 + $0x70] sm:$0xff]  ;;  %v204_v37 = vld [vmem:[%s927_s7 + $0x68] sm:$0xff] }
  0x11   :  { %142 = vmatpush.msra.mxu1 %v113_v21  ;;  %219 = vmatpush.msra.mxu3 %v206_v35  ;;  %v203_v38 = vld [vmem:[%s927_s7 + $0x60] sm:$0xff]  ;;  %v202_v39 = vld [vmem:[%s927_s7 + $0x58] sm:$0xff]  ;;  %v201_v40 = vld [vmem:[%s927_s7 + $0x50] sm:$0xff] }
  0x12   :  { %162 = vmatpush.msra.mxu2 %v114_v22  ;;  %v200_v41 = vld [vmem:[%s927_s7 + $0x48] sm:$0xff]  ;;  %v199_v42 = vld [vmem:[%s927_s7 + $0x40] sm:$0xff]  ;;  %v198_v43 = vld [vmem:[%s927_s7 + $0x38] sm:$0xff] }
  0x13   :  { %143 = vmatpush.msra.mxu1 %v111_v23  ;;  %220 = vmatpush.msra.mxu3 %v205_v36  ;;  %v535_v44 = vld [vmem:[%s922_s2] ss:$0 sm:$0xff]  ;;  %v197_v45 = vld [vmem:[%s927_s7 + $0x30] sm:$0xff]  ;;  %v196_v47 = vld [vmem:[%s927_s7 + $0x28] sm:$0xff] }
  0x14   :  { %163 = vmatpush.msra.mxu2 %v112_v24  ;;  %v536_v46 = vld [vmem:[%s923_s3] ss:$0 sm:$0xff]  ;;  %v194_v57 = vld [vmem:[%s927_s7 + $0x18] sm:$0xff]  ;;  %v193_v58 = vld [vmem:[%s927_s7 + $0x10] sm:$0xff] }
  0x15   :  { %144 = vmatpush.msra.mxu1 %v109_v25  ;;  %221 = vmatpush.msra.mxu3 %v204_v37  ;;  %v195_v50 = vld [vmem:[%s927_s7 + $0x20] sm:$0xff]  ;;  %v192_v59 = vld [vmem:[%s927_s7 + $0x8] sm:$0xff]  ;;  %v210_v61 = vld [vmem:[%s927_s7 + $0x98] sm:$0xff] }
  0x16   :  { %164 = vmatpush.msra.mxu2 %v110_v26  ;;  %v191_v60 = vld [vmem:[%s927_s7] sm:$0xff]  ;;  %251 = vmatpush.msrb.mxu0 %v210_v61  ;;  %v209_v62 = vld [vmem:[%s927_s7 + $0x90] sm:$0xff]  ;;  %v208_v63 = vld [vmem:[%s927_s7 + $0x88] sm:$0xff] }
  0x17   :  { %145 = vmatpush.msra.mxu1 %v107_v27  ;;  %222 = vmatpush.msra.mxu3 %v203_v38  ;;  %v207_v0 = vld [vmem:[%s927_s7 + $0x80] sm:$0xff]  ;;  %v269_v1 = vld [vmem:[%s929_s9 + $0x48] sm:$0xff]  ;;  %v267_v3 = vld [vmem:[%s929_s9 + $0x38] sm:$0xff] }
  0x18   :  { %165 = vmatpush.msra.mxu2 %v108_v28  ;;  %252 = vmatpush.msrb.mxu0 %v209_v62  ;;  %v268_v2 = vld [vmem:[%s929_s9 + $0x40] sm:$0xff]  ;;  %v266_v4 = vld [vmem:[%s929_s9 + $0x30] sm:$0xff]  ;;  %v265_v5 = vld [vmem:[%s929_s9 + $0x28] sm:$0xff]  ;;  %v586_v28 = vmov 0.0  }
  0x19   :  { %146 = vmatpush.msra.mxu1 %v105_v29  ;;  %223 = vmatpush.msra.mxu3 %v202_v39  ;;  %v264_v6 = vld [vmem:[%s929_s9 + $0x20] sm:$0xff]  ;;  %v263_v21 = vld [vmem:[%s929_s9 + $0x18] sm:$0xff]  ;;  %v262_v22 = vld [vmem:[%s929_s9 + $0x10] sm:$0xff] }
  0x1a   :  { %166 = vmatpush.msra.mxu2 %v106_v30  ;;  %253 = vmatpush.msrb.mxu0 %v208_v63  ;;  %v173_v7 = vld [vmem:[%s925_s5] sm:$0x3]  ;;  %v300_v23 = vld [vmem:[%s930_s10 + $0x10] sm:$0xf]  ;;  %v261_v24 = vld [vmem:[%s929_s9 + $0x8] sm:$0xff] }
  0x1b   :  { %147 = vmatpush.msra.mxu1 %v103_v31  ;;  %224 = vmatpush.msra.mxu3 %v201_v40  ;;  %v181_v8 = vld [vmem:[%s926_s6] sm:$0x3]  ;;  %v175_v9 = vperm.slane %v173_v7, 0  ;;  %v176_v13 = vperm.slane %v173_v7, 1  ;;  %v299_v25 = vld [vmem:[%s930_s10 + $0x8] sm:$0xff] }
  0x1c   :  { %167 = vmatpush.msra.mxu2 %v104_v32  ;;  %254 = vmatpush.msrb.mxu0 %v207_v0  ;;  %v183_v10 = vperm.slane %v181_v8, 0  ;;  %v184_v15 = vperm.slane %v181_v8, 1  ;;  %v260_v26 = vld [vmem:[%s929_s9] sm:$0xff] }
  0x1d   :  { %148 = vmatpush.msra.mxu1 %v101_v33  ;;  %225 = vmatpush.msra.mxu3 %v200_v41  ;;  %v298_v27 = vld [vmem:[%s930_s10] sm:$0xff]  ;;  %s587_s10 = smov 88  }
  0x1e   :  { %168 = vmatpush.msra.mxu2 %v102_v34  ;;  %284 = vmatpush.msra.mxu0 %v269_v1  ;;  %v537_v29 = vld [vmem:[%s928_s8] ss:$0 sm:$0xff]  ;;  %s588_s8 = smov 20  }
  0x1f   :  { %226 = vmatpush.msra.mxu3 %v199_v42  ;;  %522 = vmatpush.msk.msrb.mxu1 %vm305_vm4, %v300_v23  ;;  %v538_v35 = vld [vmem:[%s931_s11] ss:$0 sm:$0xff]  ;;  %s589_s11 = smov 40  }
  0x20   :  { %285 = vmatpush.msra.mxu0 %v268_v2  ;;  %524 = vmatpush.msk.msrb.mxu2 %vm305_vm4, %v300_v23  ;;  %v440_v23 = vld [vmem:[%s932_s12 + $0x10] sm:$0xf] }
  0x21   :  { %227 = vmatpush.msra.mxu3 %v198_v43  ;;  %323 = vmatpush.msrb.mxu1 %v299_v25 }
  0x22   :  { %286 = vmatpush.msra.mxu0 %v267_v3  ;;  %386 = vmatpush.msrb.mxu2 %v299_v25  ;;  %v438_v25 = vld [vmem:[%s932_s12] sm:$0xff] }
  0x23   :  { %228 = vmatpush.msra.mxu3 %v197_v45  ;;  %324 = vmatpush.msrb.mxu1 %v298_v27 }
  0x24   :  { %287 = vmatpush.msra.mxu0 %v266_v4  ;;  %387 = vmatpush.msrb.mxu2 %v298_v27 }
  0x25   :  { %229 = vmatpush.msra.mxu3 %v196_v47 }
  0x26   :  { %288 = vmatpush.msra.mxu0 %v265_v5 }
  0x27   :  { %230 = vmatpush.msra.mxu3 %v195_v50 }
  0x28   :  { %289 = vmatpush.msra.mxu0 %v264_v6 }
  0x29   :  { %231 = vmatpush.msra.mxu3 %v194_v57 }
  0x2a   :  { %290 = vmatpush.msra.mxu0 %v263_v21 }
  0x2b   :  { %232 = vmatpush.msra.mxu3 %v193_v58 }
  0x2c   :  { %291 = vmatpush.msra.mxu0 %v262_v22 }
  0x2d   :  { %233 = vmatpush.msra.mxu3 %v192_v59 }
  0x2e   :  { %292 = vmatpush.msra.mxu0 %v261_v24  ;;  %v439_v24 = vld [vmem:[%s932_s12 + $0x8] sm:$0xff]  ;;  %s591_s12 = smov [#allocation2]  }
  0x2f   :  { %234 = vmatpush.msra.mxu3 %v191_v60 }
  0x30   :  { %293 = vmatpush.msra.mxu0 %v260_v26 }
  0x31   :  { %527 = vmatpush.msk.msrb.mxu3 %vm305_vm4, %v440_v23 }
  0x33   :  { %467 = vmatpush.msrb.mxu3 %v439_v24 }
  0x35   :  { %468 = vmatpush.msrb.mxu3 %v438_v25 }
  0x8a   :  { %v80_v48 = vpop.f32.mrf.mxu0 }
  0x8b   :  { %v87_v49 = vmul.f32 %v535_v44, %v80_v48 }
  0x8d   :  { %v92_v51 = vadd.f32 %v536_v46, %v87_v49 }
  0x8f   :  { %v94_v52 = vrot.slane %v92_v51, 2  ;;  %v97_v54 = vrot.slane %v92_v51, 4 }
  0x91   :  { %v96_v53 = vmax.f32 %v92_v51, %v94_v52 }
  0x93   :  { %v99_v55 = vmax.f32 %v96_v53, %v97_v54 }
  0x95   :  { %v100_v56 = vmax.f32 %v99_v55, 0.0 }
  0x97   :  { %518 = vmatmul.msk.f32.vlgmr.msra.gmra.mxu1 %vm129_vm2, %v100_v56  ;;  %519 = vmatmul.msk.f32.vlgmr.msra.gmra.mxu2 %vm129_vm2, %v100_v56 }
  0x9f   :  { %325 = vmatmul.f32.vlgmr.msrb.gmra.mxu1 %v586_v28 }
 0x114   :  { %v150_v11 = vpop.f32.mrf.mxu1 }
 0x115   :  { %v179_v12 = vmul.f32 %v175_v9, %v150_v11 }
 0x117   :  { %v187_v14 = vadd.f32 %v183_v10, %v179_v12 }
 0x119   :  { %v189_v16 = vmax.f32 %v187_v14, 0.0 }
 0x11a   :  { %v170_v17 = vpop.f32.mrf.mxu2 }
 0x11b   :  { %v180_v18 = vmul.f32 %v176_v13, %v170_v17  ;;  %235 = vmatmul.f32.vlgmr.msra.gmra.mxu3 %v189_v16 }
 0x11c   :  { %v326_v37 = vpop.f32.mrf.mxu1 }
 0x11d   :  { %v188_v19 = vadd.f32 %v184_v15, %v180_v18 }
 0x11f   :  { %v190_v20 = vmax.f32 %v188_v19, 0.0 }
 0x121   :  { %520 = vmatmul.msk.f32.vlgmr.msrb.gmra.mxu0 %vm215_vm3, %v190_v20 }
 0x19e   :  { %v236_v30 = vpop.f32.mrf.mxu3  ;;  %v256_v32 = vpop.f32.mrf.mxu0 }
 0x19f   :  { %v237_v31 = vadd.f32 %v537_v29, %v236_v30  ;;  %v539_v30 = vld [vmem:[%s933_s13] ss:$0 sm:$0xff]  ;;  %s505_s13 = sshll.u32 %s591_s12, 4  ;;  %s506_s13 = int_to_ptr.vmem [resolvable:$true] %s505_s13 }
 0x1a1   :  { %v257_v33 = vadd.f32 %v256_v32, %v237_v31 }
 0x1a3   :  { %v259_v34 = vmax.f32 %v257_v33, 0.0 }
 0x1a5   :  { %521 = vmatmul.msk.f32.vlgmr.msra.gmra.mxu0 %vm274_vm5, %v259_v34 }
 0x222   :  { %v295_v36 = vpop.f32.mrf.mxu0 }
 0x223   :  { %v296_v38 = vadd.f32 %v538_v35, %v295_v36 }
 0x225   :  { %v329_v39 = vadd.f32 %v326_v37, %v296_v38 }
 0x227   :  { %540 = vtanh.f32 %v329_v39  ;;  %v523_v41 = vmul.f32 -1.442695, %v329_v39 }
 0x229   :  { %542 = vpow2.f32 %v523_v41 }
 0x22d   :  { %v541_v40 = vpop.eup %540 }
 0x22e   :  { %352 = vrot.lane.b32.xlu0 %v541_v40, %s587_s10 }
 0x22f   :  { %v543_v42 = vpop.eup %542 }
 0x230   :  { %v333_v43 = vadd.f32 1.0, %v543_v42 }
 0x232   :  { %544 = vrcp.f32 %v333_v43  ;;  %v345_v49 = vand.u32 2147483648, %v333_v43  ;;  %vm339_vm7 = vweird.f32 %v333_v43  ;;  %v343_v50 = vand.u32 2147483647, %v333_v43 }
 0x234   :  { %v346_v52 = vor.u32 1.1754944e-38, %v345_v49  ;;  %vm344_vm9 = vcmp.eq.f32.partialorder %v343_v50, 8.507059e+37 }
 0x238   :  { %v545_v44 = vpop.eup %544 }
 0x239   :  { %v335_v45 = vmul.f32 %v545_v44, %v333_v43  ;;  %vm340_vm6 = vweird.f32 %v545_v44 }
 0x23a   :  { %vm341_vm8 = vmor %vm339_vm7, %vm340_vm6 }
 0x23b   :  { %v336_v46 = vsub.f32 1.0, %v335_v45 }
 0x23d   :  { %v337_v47 = vmul.f32 %v545_v44, %v336_v46 }
 0x23f   :  { %v338_v48 = vadd.f32 %v545_v44, %v337_v47 }
 0x241   :  { %v342_v51 = vsel %vm341_vm8, %v545_v44, %v338_v48 }
 0x242   :  { %v347_v54 = vsel %vm344_vm9, %v346_v52, %v342_v51 }
 0x243   :  { %v350_v56 = vmul.f32 0.0, %v347_v54 }
 0x2a0   :  { %v353_v53 = vpop.permute.xlu0 %352 }
 0x2a1   :  { %v355_v55 = vmul.f32 %v353_v53, %v347_v54 }
 0x2a3   :  { %357 = vrot.lane.b32.xlu0 %v355_v55, %s588_s8 }
 0x315   :  { %v358_v57 = vpop.permute.xlu0 %357 }
 0x316   :  { %v360_v58 = vadd.f32 %v358_v57, %v350_v56 }
 0x318   :  { %546 = vtanh.f32 %v360_v58  ;;  %v417_v18 = vrot.slane %v360_v58, 7 }
 0x31e   :  { %v547_v59 = vpop.eup %546 }
 0x31f   :  { %363 = vrot.lane.b32.xlu1 %v547_v59, %s589_s11 }
 0x391   :  { %v364_v60 = vpop.permute.xlu1 %363 }
 0x392   :  { %v366_v61 = vmul.f32 %v364_v60, %v347_v54 }
 0x394   :  { %368 = vrot.lane.b32.xlu1 %v366_v61, %s590_s22 }
 0x406   :  { %v369_v62 = vpop.permute.xlu1 %368 }
 0x407   :  { %525 = vmatmul.msk.f32.vlgmr.msrb.gmra.mxu2 %vm301_vm10, %v369_v62 }
 0x48a   :  { %v389_v63 = vpop.f32.mrf.mxu2 }
 0x48b   :  { %v393_v0 = vrot.slane %v389_v63, 7 }
 0x48d   :  { %v395_v1 = vadd.f32 %v393_v0, %v296_v38 }
 0x48f   :  { %548 = vtanh.f32 %v395_v1  ;;  %v526_v3 = vmul.f32 -1.442695, %v395_v1 }
 0x491   :  { %550 = vpow2.f32 %v526_v3 }
 0x495   :  { %v549_v2 = vpop.eup %548 }
 0x496   :  { %421 = vrot.lane.b32.xlu2 %v549_v2, %s587_s10 }
 0x497   :  { %v551_v4 = vpop.eup %550 }
 0x498   :  { %v399_v5 = vadd.f32 1.0, %v551_v4 }
 0x49a   :  { %552 = vrcp.f32 %v399_v5  ;;  %v411_v11 = vand.u32 2147483648, %v399_v5  ;;  %vm405_vm12 = vweird.f32 %v399_v5  ;;  %v409_v12 = vand.u32 2147483647, %v399_v5 }
 0x49c   :  { %v412_v14 = vor.u32 1.1754944e-38, %v411_v11  ;;  %vm410_vm14 = vcmp.eq.f32.partialorder %v409_v12, 8.507059e+37 }
 0x4a0   :  { %v553_v6 = vpop.eup %552 }
 0x4a1   :  { %v401_v7 = vmul.f32 %v553_v6, %v399_v5  ;;  %vm406_vm11 = vweird.f32 %v553_v6 }
 0x4a2   :  { %vm407_vm13 = vmor %vm405_vm12, %vm406_vm11 }
 0x4a3   :  { %v402_v8 = vsub.f32 1.0, %v401_v7 }
 0x4a5   :  { %v403_v9 = vmul.f32 %v553_v6, %v402_v8 }
 0x4a7   :  { %v404_v10 = vadd.f32 %v553_v6, %v403_v9 }
 0x4a9   :  { %v408_v13 = vsel %vm407_vm13, %v553_v6, %v404_v10 }
 0x4aa   :  { %v413_v16 = vsel %vm410_vm14, %v412_v14, %v408_v13 }
 0x4ab   :  { %v419_v19 = vmul.f32 %v417_v18, %v413_v16 }
 0x4f0   :  { %v422_v15 = vpop.permute.xlu2 %421 }
 0x4f1   :  { %v424_v17 = vmul.f32 %v422_v15, %v413_v16 }
 0x4f3   :  { %426 = vrot.lane.b32.xlu2 %v424_v17, %s588_s8 }
 0x54d   :  { %v427_v20 = vpop.permute.xlu2 %426 }
 0x54e   :  { %v429_v21 = vadd.f32 %v427_v20, %v419_v19 }
 0x550   :  { %554 = vtanh.f32 %v429_v21 }
 0x556   :  { %v555_v22 = vpop.eup %554 }
 0x557   :  { %432 = vrot.lane.b32.xlu0 %v555_v22, %s589_s11 }
 0x5c9   :  { %v433_v26 = vpop.permute.xlu0 %432 }
 0x5ca   :  { %v435_v27 = vmul.f32 %v433_v26, %v413_v16 }
 0x5cc   :  { %v437_v28 = vsel %vm436_vm15, %v366_v61, %v435_v27 }
 0x5cd   :  { %446 = vrot.lane.b32.xlu1 %v437_v28, %s590_s22 }
 0x63f   :  { %v447_v29 = vpop.permute.xlu1 %446 }
 0x640   :  { %528 = vmatmul.msk.f32.vlgmr.msrb.gmra.mxu3 %vm301_vm10, %v447_v29 }
 0x6c3   :  { %v470_v31 = vpop.f32.mrf.mxu3 }
 0x6c4   :  { %v471_v32 = vadd.f32 %v539_v30, %v470_v31 }
 0x6c6   :  { %v473_v33 = vmax.f32 %v471_v32, 0.0 }
 0x6c8   :  { %v475_v34 = vsel %vm474_vm0, %v473_v33, -inf }
 0x6c9   :  { %476 = vmax.xlane.f32.xlu2 %v475_v34 }
 0x73c   :  { %v477_v35 = vpop.xlane.xlu2 %476 }
 0x73d   :  { %v478_v36 = vsub.f32 %v473_v33, %v477_v35 }
 0x73f   :  { %v479_v37 = vmul.f32 1.442695, %v478_v36 }
 0x741   :  { %556 = vpow2.f32 %v479_v37 }
 0x747   :  { %v557_v38 = vpop.eup %556 }
 0x748   :  { %v481_v39 = vsel %vm474_vm0, %v557_v38, 0.0 }
 0x749   :  { %482 = vadd.xlane.f32.xlu0 %v481_v39 }
 0x7bc   :  { %v483_v40 = vpop.xlane.xlu0 %482 }
 0x7bd   :  { %558 = vrcp.f32 %v483_v40  ;;  %v495_v44 = vand.u32 2147483648, %v483_v40  ;;  %v493_v46 = vand.u32 2147483647, %v483_v40  ;;  %vm489_vm2 = vweird.f32 %v483_v40 }
 0x7bf   :  { %v496_v48 = vor.u32 1.1754944e-38, %v495_v44  ;;  %vm494_vm4 = vcmp.eq.f32.partialorder %v493_v46, 8.507059e+37 }
 0x7c3   :  { %v559_v41 = vpop.eup %558 }
 0x7c4   :  { %v485_v42 = vmul.f32 %v559_v41, %v483_v40  ;;  %vm490_vm1 = vweird.f32 %v559_v41 }
 0x7c5   :  { %vm491_vm3 = vmor %vm489_vm2, %vm490_vm1 }
 0x7c6   :  { %v486_v43 = vsub.f32 1.0, %v485_v42 }
 0x7c8   :  { %v487_v45 = vmul.f32 %v559_v41, %v486_v43 }
 0x7ca   :  { %v488_v47 = vadd.f32 %v559_v41, %v487_v45 }
 0x7cc   :  { %v492_v49 = vsel %vm491_vm3, %v559_v41, %v488_v47 }
 0x7cd   :  { %v497_v50 = vsel %vm494_vm4, %v496_v48, %v492_v49 }
 0x7ce   :  { %v498_v51 = vmul.f32 %v557_v38, %v497_v50 }
 0x7d0   :  { %499 = vst.msk [vmem:[#allocation2] sm:$0x3] %vm474_vm0, %v498_v51 }
 0x7d1   :  { %510 = dma.vmem_to_hbm [thread:$0]  %s506_s13, 32, %s508_s30, [#allocation3]  }
 0x7d2   :  { %584 = dma.done.wait [#allocation3], 32  }
 0x7d3   :  { %585 = vsyncadd [#allocation3], 4294967264 }
 0x7d4   :  { %515 = vsyncpa [#allocation3], 1 }

</bundles_post_ra>
